<compile_context>
chip_gen: v5e
topology: v5e:2x2
jax: 0.10.0
libtpu: 0.0.40
codegen_flags: <defaults>
</compile_context>

<pallas_src>
import jax
import jax.numpy as jnp
from jax.experimental import pallas as pl
from jax.experimental.pallas import tpu as pltpu

LANES = 128
TILE_ROWS = 8  # 8 x 128 = 1024 games per grid step


def bradley_terry_kernel(w_ref, l_ref, strengths_ref, out_ref):
    # w_ref, l_ref:   (TILE_ROWS, 128) int32 in VMEM  (games on lanes)
    # strengths_ref:  (T,)             f32  in SMEM
    # out_ref:        (TILE_ROWS, 128) f32  in VMEM
    w = w_ref[...]
    l = l_ref[...]

    s_w = jnp.zeros(out_ref.shape, dtype=jnp.float32)
    s_l = jnp.zeros(out_ref.shape, dtype=jnp.float32)

    # Gather via a short unrolled select chain over teams (T is small & static):
    # pure VPU work, full 128-lane width, no cross-lane reductions.
    T = strengths_ref.shape[0]
    for t in range(T):
        s_t = strengths_ref[t]  # scalar read from SMEM
        s_w = jnp.where(w == t, s_t, s_w)
        s_l = jnp.where(l == t, s_t, s_l)

    # exp(sw)/(exp(sw)+exp(sl)) == sigmoid(sw - sl)  (numerically stable form)
    d = s_w - s_l
    out_ref[...] = 1.0 / (1.0 + jnp.exp(-d))


def bradley_terry(x_idx, strengths, tile_rows=TILE_ROWS):
    """x_idx: (N, 2) int array of [winner, loser] team indices.
    strengths: (T,) float parameter vector.
    Returns (N,) float32 win probabilities."""
    N = x_idx.shape[0]
    T = strengths.shape[0]

    tile_games = tile_rows * LANES
    padded_n = pl.cdiv(N, tile_games) * tile_games
    rows = padded_n // LANES

    idx = x_idx.astype(jnp.int32)
    # Lane-dense layout: games along the 128-lane axis; pad tail with index 0
    # (padded results are discarded in the wrapper).
    winners = jnp.pad(idx[:, 0], (0, padded_n - N)).reshape(rows, LANES)
    losers = jnp.pad(idx[:, 1], (0, padded_n - N)).reshape(rows, LANES)
    s = strengths.astype(jnp.float32)

    grid = (rows // tile_rows,)

    out = pl.pallas_call(
        bradley_terry_kernel,
        out_shape=jax.ShapeDtypeStruct((rows, LANES), jnp.float32),
        grid=grid,
        in_specs=[
            pl.BlockSpec((tile_rows, LANES), lambda i: (i, 0)),
            pl.BlockSpec((tile_rows, LANES), lambda i: (i, 0)),
            pl.BlockSpec(memory_space=pltpu.MemorySpace.SMEM),
        ],
        out_specs=pl.BlockSpec((tile_rows, LANES), lambda i: (i, 0)),
        compiler_params=pltpu.CompilerParams(
            dimension_semantics=("parallel",),
            vmem_limit_bytes=32 * 1024 * 1024,
        ),
        cost_estimate=pl.CostEstimate(
            flops=4 * padded_n * T,
            transcendentals=padded_n,
            bytes_accessed=12 * padded_n + 4 * T,
        ),
    )(winners, losers, s)

    return out.reshape(padded_n)[:N]


def bradley_terry_ref(x_idx, strengths):
    w = x_idx[:, 0]
    l = x_idx[:, 1]
    ew = jnp.exp(strengths[w])
    el = jnp.exp(strengths[l])
    return ew / (ew + el)


if __name__ == "__main__":
    teams = 16
    n_games = 8

    # Parameter init identical to the PyTorch module: ones(teams),
    # perturbed deterministically so probabilities are not all 0.5.
    key = jax.random.PRNGKey(0)
    k_s, k_x = jax.random.split(key)
    strengths = jnp.ones((teams,), dtype=jnp.float32)
    strengths = strengths + 0.1 * jax.random.normal(k_s, (teams,), dtype=jnp.float32)

    # x: (N, 2) int indices -> column 0 = winner team id, column 1 = loser team id.
    x = jax.random.randint(k_x, (n_games, 2), 0, teams, dtype=jnp.int32)

    probs = bradley_terry(x, strengths)
    probs = jax.block_until_ready(probs)

    ref = bradley_terry_ref(x, strengths)
    assert probs.shape == (n_games,)
    assert jnp.allclose(probs, ref, atol=1e-5, rtol=1e-5), (probs, ref)

    print("KERNEL_OK")
</pallas_src>

<mosaic_0001>
module attributes {stable_mosaic.version = 11 : i64} {
  func.func @bradley_terry_kernel(%arg0: i32, %arg1: memref<8x128xi32, #tpu.memory_space<vmem>>, %arg2: memref<8x128xi32, #tpu.memory_space<vmem>>, %arg3: memref<16xf32, #tpu.memory_space<smem>>, %arg4: memref<8x128xf32, #tpu.memory_space<vmem>>) attributes {dimension_semantics = [#tpu.dimension_semantics<parallel>], iteration_bounds = array<i64: 1>, scalar_prefetch = 0 : i64, scratch_operands = 0 : i64, tpu.core_type = #tpu.core_type<tc>, window_params = [{transform_indices = @transform_0, window_bounds = array<i64: 8, 128>}, {transform_indices = @transform_1, window_bounds = array<i64: 8, 128>}, {transform_indices = @transform_2, window_bounds = array<i64: 16>}, {transform_indices = @transform_3, window_bounds = array<i64: 8, 128>}]} {
    %c0 = arith.constant 0 : index
    %c0_0 = arith.constant 0 : index
    %0 = vector.load %arg1[%c0, %c0_0] : memref<8x128xi32, #tpu.memory_space<vmem>>, vector<8x128xi32>
    %c0_1 = arith.constant 0 : index
    %c0_2 = arith.constant 0 : index
    %1 = vector.load %arg2[%c0_1, %c0_2] : memref<8x128xi32, #tpu.memory_space<vmem>>, vector<8x128xi32>
    %cst = arith.constant 0.000000e+00 : f32
    %2 = vector.broadcast %cst : f32 to vector<8x128xf32>
    %cst_3 = arith.constant 0.000000e+00 : f32
    %3 = vector.broadcast %cst_3 : f32 to vector<8x128xf32>
    %c0_4 = arith.constant 0 : index
    %4 = memref.load %arg3[%c0_4] : memref<16xf32, #tpu.memory_space<smem>>
    %c0_i32 = arith.constant 0 : i32
    %5 = vector.broadcast %c0_i32 : i32 to vector<8x128xi32>
    %6 = arith.cmpi eq, %0, %5 : vector<8x128xi32>
    %7 = vector.broadcast %4 : f32 to vector<8x128xf32>
    %8 = arith.select %6, %7, %2 : vector<8x128xi1>, vector<8x128xf32>
    %c0_i32_5 = arith.constant 0 : i32
    %9 = vector.broadcast %c0_i32_5 : i32 to vector<8x128xi32>
    %10 = arith.cmpi eq, %1, %9 : vector<8x128xi32>
    %11 = vector.broadcast %4 : f32 to vector<8x128xf32>
    %12 = arith.select %10, %11, %3 : vector<8x128xi1>, vector<8x128xf32>
    %c1 = arith.constant 1 : index
    %13 = memref.load %arg3[%c1] : memref<16xf32, #tpu.memory_space<smem>>
    %c1_i32 = arith.constant 1 : i32
    %14 = vector.broadcast %c1_i32 : i32 to vector<8x128xi32>
    %15 = arith.cmpi eq, %0, %14 : vector<8x128xi32>
    %16 = vector.broadcast %13 : f32 to vector<8x128xf32>
    %17 = arith.select %15, %16, %8 : vector<8x128xi1>, vector<8x128xf32>
    %c1_i32_6 = arith.constant 1 : i32
    %18 = vector.broadcast %c1_i32_6 : i32 to vector<8x128xi32>
    %19 = arith.cmpi eq, %1, %18 : vector<8x128xi32>
    %20 = vector.broadcast %13 : f32 to vector<8x128xf32>
    %21 = arith.select %19, %20, %12 : vector<8x128xi1>, vector<8x128xf32>
    %c2 = arith.constant 2 : index
    %22 = memref.load %arg3[%c2] : memref<16xf32, #tpu.memory_space<smem>>
    %c2_i32 = arith.constant 2 : i32
    %23 = vector.broadcast %c2_i32 : i32 to vector<8x128xi32>
    %24 = arith.cmpi eq, %0, %23 : vector<8x128xi32>
    %25 = vector.broadcast %22 : f32 to vector<8x128xf32>
    %26 = arith.select %24, %25, %17 : vector<8x128xi1>, vector<8x128xf32>
    %c2_i32_7 = arith.constant 2 : i32
    %27 = vector.broadcast %c2_i32_7 : i32 to vector<8x128xi32>
    %28 = arith.cmpi eq, %1, %27 : vector<8x128xi32>
    %29 = vector.broadcast %22 : f32 to vector<8x128xf32>
    %30 = arith.select %28, %29, %21 : vector<8x128xi1>, vector<8x128xf32>
    %c3 = arith.constant 3 : index
    %31 = memref.load %arg3[%c3] : memref<16xf32, #tpu.memory_space<smem>>
    %c3_i32 = arith.constant 3 : i32
    %32 = vector.broadcast %c3_i32 : i32 to vector<8x128xi32>
    %33 = arith.cmpi eq, %0, %32 : vector<8x128xi32>
    %34 = vector.broadcast %31 : f32 to vector<8x128xf32>
    %35 = arith.select %33, %34, %26 : vector<8x128xi1>, vector<8x128xf32>
    %c3_i32_8 = arith.constant 3 : i32
    %36 = vector.broadcast %c3_i32_8 : i32 to vector<8x128xi32>
    %37 = arith.cmpi eq, %1, %36 : vector<8x128xi32>
    %38 = vector.broadcast %31 : f32 to vector<8x128xf32>
    %39 = arith.select %37, %38, %30 : vector<8x128xi1>, vector<8x128xf32>
    %c4 = arith.constant 4 : index
    %40 = memref.load %arg3[%c4] : memref<16xf32, #tpu.memory_space<smem>>
    %c4_i32 = arith.constant 4 : i32
    %41 = vector.broadcast %c4_i32 : i32 to vector<8x128xi32>
    %42 = arith.cmpi eq, %0, %41 : vector<8x128xi32>
    %43 = vector.broadcast %40 : f32 to vector<8x128xf32>
    %44 = arith.select %42, %43, %35 : vector<8x128xi1>, vector<8x128xf32>
    %c4_i32_9 = arith.constant 4 : i32
    %45 = vector.broadcast %c4_i32_9 : i32 to vector<8x128xi32>
    %46 = arith.cmpi eq, %1, %45 : vector<8x128xi32>
    %47 = vector.broadcast %40 : f32 to vector<8x128xf32>
    %48 = arith.select %46, %47, %39 : vector<8x128xi1>, vector<8x128xf32>
    %c5 = arith.constant 5 : index
    %49 = memref.load %arg3[%c5] : memref<16xf32, #tpu.memory_space<smem>>
    %c5_i32 = arith.constant 5 : i32
    %50 = vector.broadcast %c5_i32 : i32 to vector<8x128xi32>
    %51 = arith.cmpi eq, %0, %50 : vector<8x128xi32>
    %52 = vector.broadcast %49 : f32 to vector<8x128xf32>
    %53 = arith.select %51, %52, %44 : vector<8x128xi1>, vector<8x128xf32>
    %c5_i32_10 = arith.constant 5 : i32
    %54 = vector.broadcast %c5_i32_10 : i32 to vector<8x128xi32>
    %55 = arith.cmpi eq, %1, %54 : vector<8x128xi32>
    %56 = vector.broadcast %49 : f32 to vector<8x128xf32>
    %57 = arith.select %55, %56, %48 : vector<8x128xi1>, vector<8x128xf32>
    %c6 = arith.constant 6 : index
    %58 = memref.load %arg3[%c6] : memref<16xf32, #tpu.memory_space<smem>>
    %c6_i32 = arith.constant 6 : i32
    %59 = vector.broadcast %c6_i32 : i32 to vector<8x128xi32>
    %60 = arith.cmpi eq, %0, %59 : vector<8x128xi32>
    %61 = vector.broadcast %58 : f32 to vector<8x128xf32>
    %62 = arith.select %60, %61, %53 : vector<8x128xi1>, vector<8x128xf32>
    %c6_i32_11 = arith.constant 6 : i32
    %63 = vector.broadcast %c6_i32_11 : i32 to vector<8x128xi32>
    %64 = arith.cmpi eq, %1, %63 : vector<8x128xi32>
    %65 = vector.broadcast %58 : f32 to vector<8x128xf32>
    %66 = arith.select %64, %65, %57 : vector<8x128xi1>, vector<8x128xf32>
    %c7 = arith.constant 7 : index
    %67 = memref.load %arg3[%c7] : memref<16xf32, #tpu.memory_space<smem>>
    %c7_i32 = arith.constant 7 : i32
    %68 = vector.broadcast %c7_i32 : i32 to vector<8x128xi32>
    %69 = arith.cmpi eq, %0, %68 : vector<8x128xi32>
    %70 = vector.broadcast %67 : f32 to vector<8x128xf32>
    %71 = arith.select %69, %70, %62 : vector<8x128xi1>, vector<8x128xf32>
    %c7_i32_12 = arith.constant 7 : i32
    %72 = vector.broadcast %c7_i32_12 : i32 to vector<8x128xi32>
    %73 = arith.cmpi eq, %1, %72 : vector<8x128xi32>
    %74 = vector.broadcast %67 : f32 to vector<8x128xf32>
    %75 = arith.select %73, %74, %66 : vector<8x128xi1>, vector<8x128xf32>
    %c8 = arith.constant 8 : index
    %76 = memref.load %arg3[%c8] : memref<16xf32, #tpu.memory_space<smem>>
    %c8_i32 = arith.constant 8 : i32
    %77 = vector.broadcast %c8_i32 : i32 to vector<8x128xi32>
    %78 = arith.cmpi eq, %0, %77 : vector<8x128xi32>
    %79 = vector.broadcast %76 : f32 to vector<8x128xf32>
    %80 = arith.select %78, %79, %71 : vector<8x128xi1>, vector<8x128xf32>
    %c8_i32_13 = arith.constant 8 : i32
    %81 = vector.broadcast %c8_i32_13 : i32 to vector<8x128xi32>
    %82 = arith.cmpi eq, %1, %81 : vector<8x128xi32>
    %83 = vector.broadcast %76 : f32 to vector<8x128xf32>
    %84 = arith.select %82, %83, %75 : vector<8x128xi1>, vector<8x128xf32>
    %c9 = arith.constant 9 : index
    %85 = memref.load %arg3[%c9] : memref<16xf32, #tpu.memory_space<smem>>
    %c9_i32 = arith.constant 9 : i32
    %86 = vector.broadcast %c9_i32 : i32 to vector<8x128xi32>
    %87 = arith.cmpi eq, %0, %86 : vector<8x128xi32>
    %88 = vector.broadcast %85 : f32 to vector<8x128xf32>
    %89 = arith.select %87, %88, %80 : vector<8x128xi1>, vector<8x128xf32>
    %c9_i32_14 = arith.constant 9 : i32
    %90 = vector.broadcast %c9_i32_14 : i32 to vector<8x128xi32>
    %91 = arith.cmpi eq, %1, %90 : vector<8x128xi32>
    %92 = vector.broadcast %85 : f32 to vector<8x128xf32>
    %93 = arith.select %91, %92, %84 : vector<8x128xi1>, vector<8x128xf32>
    %c10 = arith.constant 10 : index
    %94 = memref.load %arg3[%c10] : memref<16xf32, #tpu.memory_space<smem>>
    %c10_i32 = arith.constant 10 : i32
    %95 = vector.broadcast %c10_i32 : i32 to vector<8x128xi32>
    %96 = arith.cmpi eq, %0, %95 : vector<8x128xi32>
    %97 = vector.broadcast %94 : f32 to vector<8x128xf32>
    %98 = arith.select %96, %97, %89 : vector<8x128xi1>, vector<8x128xf32>
    %c10_i32_15 = arith.constant 10 : i32
    %99 = vector.broadcast %c10_i32_15 : i32 to vector<8x128xi32>
    %100 = arith.cmpi eq, %1, %99 : vector<8x128xi32>
    %101 = vector.broadcast %94 : f32 to vector<8x128xf32>
    %102 = arith.select %100, %101, %93 : vector<8x128xi1>, vector<8x128xf32>
    %c11 = arith.constant 11 : index
    %103 = memref.load %arg3[%c11] : memref<16xf32, #tpu.memory_space<smem>>
    %c11_i32 = arith.constant 11 : i32
    %104 = vector.broadcast %c11_i32 : i32 to vector<8x128xi32>
    %105 = arith.cmpi eq, %0, %104 : vector<8x128xi32>
    %106 = vector.broadcast %103 : f32 to vector<8x128xf32>
    %107 = arith.select %105, %106, %98 : vector<8x128xi1>, vector<8x128xf32>
    %c11_i32_16 = arith.constant 11 : i32
    %108 = vector.broadcast %c11_i32_16 : i32 to vector<8x128xi32>
    %109 = arith.cmpi eq, %1, %108 : vector<8x128xi32>
    %110 = vector.broadcast %103 : f32 to vector<8x128xf32>
    %111 = arith.select %109, %110, %102 : vector<8x128xi1>, vector<8x128xf32>
    %c12 = arith.constant 12 : index
    %112 = memref.load %arg3[%c12] : memref<16xf32, #tpu.memory_space<smem>>
    %c12_i32 = arith.constant 12 : i32
    %113 = vector.broadcast %c12_i32 : i32 to vector<8x128xi32>
    %114 = arith.cmpi eq, %0, %113 : vector<8x128xi32>
    %115 = vector.broadcast %112 : f32 to vector<8x128xf32>
    %116 = arith.select %114, %115, %107 : vector<8x128xi1>, vector<8x128xf32>
    %c12_i32_17 = arith.constant 12 : i32
    %117 = vector.broadcast %c12_i32_17 : i32 to vector<8x128xi32>
    %118 = arith.cmpi eq, %1, %117 : vector<8x128xi32>
    %119 = vector.broadcast %112 : f32 to vector<8x128xf32>
    %120 = arith.select %118, %119, %111 : vector<8x128xi1>, vector<8x128xf32>
    %c13 = arith.constant 13 : index
    %121 = memref.load %arg3[%c13] : memref<16xf32, #tpu.memory_space<smem>>
    %c13_i32 = arith.constant 13 : i32
    %122 = vector.broadcast %c13_i32 : i32 to vector<8x128xi32>
    %123 = arith.cmpi eq, %0, %122 : vector<8x128xi32>
    %124 = vector.broadcast %121 : f32 to vector<8x128xf32>
    %125 = arith.select %123, %124, %116 : vector<8x128xi1>, vector<8x128xf32>
    %c13_i32_18 = arith.constant 13 : i32
    %126 = vector.broadcast %c13_i32_18 : i32 to vector<8x128xi32>
    %127 = arith.cmpi eq, %1, %126 : vector<8x128xi32>
    %128 = vector.broadcast %121 : f32 to vector<8x128xf32>
    %129 = arith.select %127, %128, %120 : vector<8x128xi1>, vector<8x128xf32>
    %c14 = arith.constant 14 : index
    %130 = memref.load %arg3[%c14] : memref<16xf32, #tpu.memory_space<smem>>
    %c14_i32 = arith.constant 14 : i32
    %131 = vector.broadcast %c14_i32 : i32 to vector<8x128xi32>
    %132 = arith.cmpi eq, %0, %131 : vector<8x128xi32>
    %133 = vector.broadcast %130 : f32 to vector<8x128xf32>
    %134 = arith.select %132, %133, %125 : vector<8x128xi1>, vector<8x128xf32>
    %c14_i32_19 = arith.constant 14 : i32
    %135 = vector.broadcast %c14_i32_19 : i32 to vector<8x128xi32>
    %136 = arith.cmpi eq, %1, %135 : vector<8x128xi32>
    %137 = vector.broadcast %130 : f32 to vector<8x128xf32>
    %138 = arith.select %136, %137, %129 : vector<8x128xi1>, vector<8x128xf32>
    %c15 = arith.constant 15 : index
    %139 = memref.load %arg3[%c15] : memref<16xf32, #tpu.memory_space<smem>>
    %c15_i32 = arith.constant 15 : i32
    %140 = vector.broadcast %c15_i32 : i32 to vector<8x128xi32>
    %141 = arith.cmpi eq, %0, %140 : vector<8x128xi32>
    %142 = vector.broadcast %139 : f32 to vector<8x128xf32>
    %143 = arith.select %141, %142, %134 : vector<8x128xi1>, vector<8x128xf32>
    %c15_i32_20 = arith.constant 15 : i32
    %144 = vector.broadcast %c15_i32_20 : i32 to vector<8x128xi32>
    %145 = arith.cmpi eq, %1, %144 : vector<8x128xi32>
    %146 = vector.broadcast %139 : f32 to vector<8x128xf32>
    %147 = arith.select %145, %146, %138 : vector<8x128xi1>, vector<8x128xf32>
    %148 = arith.subf %143, %147 : vector<8x128xf32>
    %cst_21 = arith.constant 0.000000e+00 : f32
    %149 = vector.broadcast %cst_21 : f32 to vector<8x128xf32>
    %150 = arith.subf %149, %148 : vector<8x128xf32>
    %151 = math.exp %150 : vector<8x128xf32>
    %cst_22 = arith.constant 1.000000e+00 : f32
    %152 = vector.broadcast %cst_22 : f32 to vector<8x128xf32>
    %153 = arith.addf %152, %151 : vector<8x128xf32>
    %cst_23 = arith.constant 1.000000e+00 : f32
    %154 = vector.broadcast %cst_23 : f32 to vector<8x128xf32>
    %155 = arith.divf %154, %153 : vector<8x128xf32>
    %c0_24 = arith.constant 0 : index
    %c0_25 = arith.constant 0 : index
    %156 = vector.load %arg4[%c0_24, %c0_25] : memref<8x128xf32, #tpu.memory_space<vmem>>, vector<8x128xf32>
    tpu.vector_store %arg4[%c0_24, %c0_25], %155 {strides = array<i32>} : memref<8x128xf32, #tpu.memory_space<vmem>>, vector<8x128xf32>,
    return
  }
  func.func @transform_0(%arg0: i32) -> (i32, i32) {
    %c0_i32 = arith.constant 0 : i32
    %c0_i32_0 = arith.constant 0 : i32
    return %arg0, %c0_i32 : i32, i32
  }
  func.func @transform_1(%arg0: i32) -> (i32, i32) {
    %c0_i32 = arith.constant 0 : i32
    %c0_i32_0 = arith.constant 0 : i32
    return %arg0, %c0_i32 : i32, i32
  }
  func.func @transform_2(%arg0: i32) -> i32 {
    %c0_i32 = arith.constant 0 : i32
    %c0_i32_0 = arith.constant 0 : i32
    return %c0_i32 : i32
  }
  func.func @transform_3(%arg0: i32) -> (i32, i32) {
    %c0_i32 = arith.constant 0 : i32
    %c0_i32_0 = arith.constant 0 : i32
    return %arg0, %c0_i32 : i32, i32
  }
}

</mosaic_0001>

<bundles_post_ra>
// kernel: tpu_custom_call.1
= control target key start
LH: loop header
LB: loop body
LE: loop exit
PB: predicated region body
PF: predicated region fallthrough
CT: control target
= control target key end

     0   :  { %8 = vsyncpa [#allocation3], 0  ;;  %s472_s0 = inlined_call_operand.hbm [shape: s32[8,128], index: 0, kind: input, shape index: {}]   ;;  %s473_s1 = inlined_call_operand.hbm [shape: s32[8,128], index: 1, kind: input, shape index: {}]   ;;  %s474_s2 = inlined_call_operand.vmem [shape: f32[16], index: 2, kind: input, shape index: {}]   ;;  %s475_s3 = inlined_call_operand.hbm [shape: f32[8,128], index: 3, kind: output, shape index: {}]  }
   0x1   :  { %9 = vsyncpa [#allocation7], 0 }
   0x2   :  { %10 = vsyncpa [#allocation5], 0 }
   0x3   :  { %11 = vsyncpa [#allocation4], 0  ;;  %s17_s14 = sshll.u32 %s472_s0, 4  ;;  %s309_s15 = smov [#allocation2]   ;;  %s18_s14 = int_to_ptr.hbm [resolvable:$true] %s17_s14 }
   0x4   :  { %s19_s16 = sshll.u32 %s309_s15, 4  ;;  %s28_s19 = sshll.u32 %s473_s1, 4  ;;  %s20_s16 = int_to_ptr.vmem [resolvable:$true] %s19_s16  ;;  %s29_s19 = int_to_ptr.hbm [resolvable:$true] %s28_s19 }
   0x5   :  { %22 = dma.hbm_to_vmem [thread:$0]  %s18_s14, 128, %s20_s16, [#allocation3]  }
   0x6   :  { %s310_s20 = smov [#allocation6]   ;;  %s39_s24 = sshll.u32 %s474_s2, 4  ;;  %s40_s24 = int_to_ptr.vmem [resolvable:$true] %s39_s24 }
   0x7   :  { %s30_s21 = sshll.u32 %s310_s20, 4  ;;  %s311_s0 = smov [#allocation8]   ;;  %s31_s21 = int_to_ptr.vmem [resolvable:$true] %s30_s21 }
   0x8   :  { %33 = dma.hbm_to_vmem [thread:$0]  %s29_s19, 128, %s31_s21, [#allocation7]  }
   0x9   :  { %42 = dma.vmem_to_smem %s40_s24, 16, %s311_s0, [#allocation5]  }
   0xa   :  { %301 = dma.done.wait [#allocation3], 128  }
   0xb   :  { %302 = vsyncadd [#allocation3], 4294967168 }
   0xc   :  { %303 = dma.done.wait [#allocation7], 128  }
   0xd   :  { %304 = vsyncadd [#allocation7], 4294967168 }
   0xe   :  { %305 = dma.done.wait [#allocation5], 16  }
   0xf   :  { %306 = vsyncadd [#allocation5], 4294967280 }
  0x10   :  { %55 = sfence }
  0x11   :  { %v342_v0 = vld [vmem:[#allocation2] sm:$0xff]  ;;  %v344_v1 = vld [vmem:[#allocation6] sm:$0xff]  ;;  %s58_s1 = sld [smem:[#allocation8]]  ;;  %s312_s12 = smov [#allocation9]  }
  0x12   :  { %s346_s25 = sld [smem:[#allocation8 + $0x1]]  ;;  %vm59_vm0 = vcmp.eq.s32.totalorder %v342_v0, 0  ;;  %vm62_vm1 = vcmp.eq.s32.totalorder %v344_v1, 0  ;;  %vm65_vm2 = vcmp.eq.s32.totalorder %v342_v0, 1  ;;  %vm68_vm3 = vcmp.eq.s32.totalorder %v344_v1, 1  ;;  %s180_s13 = sshll.u32 %s312_s12, 4  ;;  %s181_s13 = int_to_ptr.vmem [resolvable:$true] %s180_s13 }
  0x13   :  { %s352_s2 = sld [smem:[#allocation8 + $0x2]]  ;;  %vm71_vm4 = vcmp.eq.s32.totalorder %v342_v0, 2  ;;  %vm74_vm5 = vcmp.eq.s32.totalorder %v344_v1, 2  ;;  %vm77_vm6 = vcmp.eq.s32.totalorder %v342_v0, 3  ;;  %vm80_vm7 = vcmp.eq.s32.totalorder %v344_v1, 3  ;;  %s182_s16 = sshll.u32 %s475_s3, 4  ;;  %s183_s16 = int_to_ptr.hbm [resolvable:$true] %s182_s16 }
  0x14   :  { %s356_s26 = sld [smem:[#allocation8 + $0x3]]  ;;  %vm83_vm8 = vcmp.eq.s32.totalorder %v342_v0, 4  ;;  %vm95_vm12 = vcmp.eq.s32.totalorder %v342_v0, 6  ;;  %vm98_vm13 = vcmp.eq.s32.totalorder %v344_v1, 6  ;;  %vm101_vm14 = vcmp.eq.s32.totalorder %v342_v0, 7 }
  0x15   :  { %s360_s27 = sld [smem:[#allocation8 + $0x4]]  ;;  %vm107_vm9 = vcmp.eq.s32.totalorder %v342_v0, 8  ;;  %vm110_vm10 = vcmp.eq.s32.totalorder %v344_v1, 8  ;;  %vm113_vm11 = vcmp.eq.s32.totalorder %v342_v0, 9  ;;  %vm116_vm15 = vcmp.eq.s32.totalorder %v344_v1, 9 }
  0x16   :  { %s366_s28 = sld [smem:[#allocation8 + $0x5]] }
  0x17   :  { %v60_v2 = vstv %s58_s1  ;;  %s372_s29 = sld [smem:[#allocation8 + $0x6]] }
  0x18   :  { %v61_v3 = vsel %vm59_vm0, %v60_v2, 0.0  ;;  %v63_v4 = vsel %vm62_vm1, %v60_v2, 0.0  ;;  %v66_v5 = vstv %s346_s25  ;;  %s382_s30 = sld [smem:[#allocation8 + $0x7]]  ;;  %vm119_vm0 = vcmp.eq.s32.totalorder %v342_v0, 10 }
  0x19   :  { %v67_v6 = vsel %vm65_vm2, %v66_v5, %v61_v3  ;;  %v69_v7 = vsel %vm68_vm3, %v66_v5, %v63_v4  ;;  %v72_v8 = vstv %s352_s2  ;;  %s390_s4 = sld [smem:[#allocation8 + $0x8]]  ;;  %vm122_vm1 = vcmp.eq.s32.totalorder %v344_v1, 10 }
  0x1a   :  { %v73_v9 = vsel %vm71_vm4, %v72_v8, %v67_v6  ;;  %v75_v10 = vsel %vm74_vm5, %v72_v8, %v69_v7  ;;  %v78_v11 = vstv %s356_s26  ;;  %s398_s5 = sld [smem:[#allocation8 + $0x9]]  ;;  %vm125_vm2 = vcmp.eq.s32.totalorder %v342_v0, 11 }
  0x1b   :  { %v79_v12 = vsel %vm77_vm6, %v78_v11, %v73_v9  ;;  %v81_v13 = vsel %vm80_vm7, %v78_v11, %v75_v10  ;;  %v84_v14 = vstv %s360_s27  ;;  %s406_s6 = sld [smem:[#allocation8 + $0xa]]  ;;  %vm476_vm3 = vcmp.eq.s32.totalorder %v344_v1, 4 }
  0x1c   :  { %v85_v15 = vsel %vm83_vm8, %v84_v14, %v79_v12  ;;  %v87_v16 = vsel %vm476_vm3, %v84_v14, %v81_v13  ;;  %v90_v17 = vstv %s366_s28  ;;  %s414_s7 = sld [smem:[#allocation8 + $0xb]]  ;;  %vm128_vm4 = vcmp.eq.s32.totalorder %v344_v1, 11 }
  0x1d   :  { %vm477_vm5 = vcmp.eq.s32.totalorder %v342_v0, 5  ;;  %vm478_vm6 = vcmp.eq.s32.totalorder %v344_v1, 5  ;;  %v96_v20 = vstv %s372_s29  ;;  %s205_s8 = sld [smem:[#allocation8 + $0xc]]  ;;  %vm131_vm7 = vcmp.eq.s32.totalorder %v342_v0, 12 }
  0x1e   :  { %v91_v18 = vsel %vm477_vm5, %v90_v17, %v85_v15  ;;  %v93_v19 = vsel %vm478_vm6, %v90_v17, %v87_v16  ;;  %v102_v23 = vstv %s382_s30  ;;  %vm134_vm8 = vcmp.eq.s32.totalorder %v344_v1, 12  ;;  %s206_s9 = sld [smem:[#allocation8 + $0xd]] }
  0x1f   :  { %v97_v21 = vsel %vm95_vm12, %v96_v20, %v91_v18  ;;  %v99_v22 = vsel %vm98_vm13, %v96_v20, %v93_v19  ;;  %vm479_vm3 = vcmp.eq.s32.totalorder %v344_v1, 7  ;;  %v108_v26 = vstv %s390_s4  ;;  %s207_s10 = sld [smem:[#allocation8 + $0xe]] }
  0x20   :  { %v103_v24 = vsel %vm101_vm14, %v102_v23, %v97_v21  ;;  %v105_v25 = vsel %vm479_vm3, %v102_v23, %v99_v22  ;;  %vm137_vm5 = vcmp.eq.s32.totalorder %v342_v0, 13  ;;  %v114_v29 = vstv %s398_s5  ;;  %s208_s11 = sld [smem:[#allocation8 + $0xf]] }
  0x21   :  { %v109_v27 = vsel %vm107_vm9, %v108_v26, %v103_v24  ;;  %v111_v28 = vsel %vm110_vm10, %v108_v26, %v105_v25  ;;  %vm140_vm12 = vcmp.eq.s32.totalorder %v344_v1, 13  ;;  %v120_v32 = vstv %s406_s6 }
  0x22   :  { %v115_v30 = vsel %vm113_vm11, %v114_v29, %v109_v27  ;;  %v117_v31 = vsel %vm116_vm15, %v114_v29, %v111_v28  ;;  %vm143_vm13 = vcmp.eq.s32.totalorder %v342_v0, 14  ;;  %v126_v35 = vstv %s414_s7 }
  0x23   :  { %v121_v33 = vsel %vm119_vm0, %v120_v32, %v115_v30  ;;  %v123_v34 = vsel %vm122_vm1, %v120_v32, %v117_v31  ;;  %vm146_vm9 = vcmp.eq.s32.totalorder %v344_v1, 14  ;;  %v132_v38 = vstv %s205_s8 }
  0x24   :  { %v127_v36 = vsel %vm125_vm2, %v126_v35, %v121_v33  ;;  %v129_v37 = vsel %vm128_vm4, %v126_v35, %v123_v34  ;;  %vm149_vm10 = vcmp.eq.s32.totalorder %v342_v0, 15  ;;  %v138_v41 = vstv %s206_s9 }
  0x25   :  { %v133_v39 = vsel %vm131_vm7, %v132_v38, %v127_v36  ;;  %v135_v40 = vsel %vm134_vm8, %v132_v38, %v129_v37  ;;  %vm152_vm11 = vcmp.eq.s32.totalorder %v344_v1, 15  ;;  %v144_v44 = vstv %s207_s10 }
  0x26   :  { %v139_v42 = vsel %vm137_vm5, %v138_v41, %v133_v39  ;;  %v141_v43 = vsel %vm140_vm12, %v138_v41, %v135_v40  ;;  %v150_v47 = vstv %s208_s11 }
  0x27   :  { %v145_v45 = vsel %vm143_vm13, %v144_v44, %v139_v42  ;;  %v147_v46 = vsel %vm146_vm9, %v144_v44, %v141_v43 }
  0x28   :  { %v151_v48 = vsel %vm149_vm10, %v150_v47, %v145_v45  ;;  %v153_v49 = vsel %vm152_vm11, %v150_v47, %v147_v46 }
  0x29   :  { %v154_v50 = vsub.f32 %v151_v48, %v153_v49 }
  0x2b   :  { %v155_v51 = vsub.f32 0.0, %v154_v50 }
  0x2d   :  { %v156_v52 = vmul.f32 1.442695, %v155_v51 }
  0x2f   :  { %213 = vpow2.f32 %v156_v52 }
  0x35   :  { %v214_v53 = vpop.eup %213 }
  0x36   :  { %v158_v54 = vadd.f32 1.0, %v214_v53 }
  0x38   :  { %215 = vrcp.f32 %v158_v54  ;;  %v170_v57 = vand.u32 2147483648, %v158_v54  ;;  %vm164_vm14 = vweird.f32 %v158_v54  ;;  %v168_v59 = vand.u32 2147483647, %v158_v54 }
  0x3a   :  { %v171_v61 = vor.u32 1.1754944e-38, %v170_v57  ;;  %vm169_vm1 = vcmp.eq.f32.partialorder %v168_v59, 8.507059e+37 }
  0x3e   :  { %v216_v55 = vpop.eup %215 }
  0x3f   :  { %v160_v56 = vmul.f32 %v216_v55, %v158_v54  ;;  %vm165_vm15 = vweird.f32 %v216_v55 }
  0x40   :  { %vm166_vm0 = vmor %vm164_vm14, %vm165_vm15 }
  0x41   :  { %v161_v58 = vsub.f32 1.0, %v160_v56 }
  0x43   :  { %v162_v60 = vmul.f32 %v216_v55, %v161_v58 }
  0x45   :  { %v163_v62 = vadd.f32 %v216_v55, %v162_v60 }
  0x47   :  { %v167_v63 = vsel %vm166_vm0, %v216_v55, %v163_v62 }
  0x48   :  { %v172_v0 = vsel %vm169_vm1, %v171_v61, %v167_v63 }
  0x49   :  { %174 = vst [vmem:[#allocation9] sm:$0xff] %v172_v0 }
  0x4a   :  { %185 = dma.vmem_to_hbm [thread:$0]  %s181_s13, 128, %s183_s16, [#allocation4]  }
  0x4b   :  { %307 = dma.done.wait [#allocation4], 128  }
  0x4c   :  { %308 = vsyncadd [#allocation4], 4294967168 }
  0x4d   :  { %190 = vsyncpa [#allocation3], 1 }
  0x4e   :  { %191 = vsyncpa [#allocation7], 1 }
  0x4f   :  { %192 = vsyncpa [#allocation4], 1 }
  0x50   :  { %193 = vsyncpa [#allocation5], 1 }

</bundles_post_ra>
